<compile_context>
chip_gen: v5e
topology: v5e:2x2
jax: 0.10.0
libtpu: 0.0.40
codegen_flags: <defaults>
</compile_context>

<pallas_src>
import functools

import jax
import jax.numpy as jnp
import numpy as np
from jax.experimental import pallas as pl
from jax.experimental.pallas import tpu as pltpu


# --------------------------------------------------------------------------------------
# Hardware-aware sizing helpers
# --------------------------------------------------------------------------------------
def _vmem_capacity_bytes() -> int:
    """Physical VMEM per TensorCore, with a conservative fallback (v7x = 64 MiB)."""
    try:
        info = pltpu.get_tpu_info()
        for attr in ("vmem_capacity_bytes", "vmem_bytes", "vmem_size_bytes"):
            cap = getattr(info, attr, None)
            if cap:
                return int(cap)
    except Exception:
        pass
    return 64 * 1024 * 1024


def _pick_row_tile(n_nodes: int, n_heads: int, n_hidden: int, vmem_budget: int) -> int:
    """Largest row tile whose kernel-2 working set fits the budget, preferring >= 2 tiles."""
    nh = n_heads * n_hidden
    # Grid-invariant inputs (values bf16 + transposed target scores f32); Pallas
    # double-buffers every BlockSpec, so count them twice (see Buffered(1) TODO above).
    fixed = 2 * (n_nodes * nh * 2 + n_heads * n_nodes * 4)
    cands = [t for t in (1024, 512, 256, 128, 64, 32)
             if t <= n_nodes and n_nodes % t == 0]
    multi = [t for t in cands if n_nodes // t >= 2]   # let v7x's two TCs both get work
    if multi:
        cands = multi
    for t in cands:
        per_tile = (2 * t * n_nodes * 1          # int8 adjacency stripe (double-buffered)
                    + 4 * t * n_nodes * 4        # f32 elementwise temporaries (bias/e/p)
                    + 2 * t * 2 * n_heads * 4    # per-node scores
                    + 2 * t * nh * 4)            # output block
        if fixed + per_tile <= vmem_budget:
            return t
    return cands[-1] if cands else n_nodes


# --------------------------------------------------------------------------------------
# Kernel 1: fused feature transform + attention-score projections (single bf16 MXU pass)
# --------------------------------------------------------------------------------------
def _transform_kernel(h_ref, w_ref, vals_ref, sc_ref, *, nh: int):
    # h_ref:    (TILE_N, F)               bf16 node features (row tile)
    # w_ref:    (F, nh + 2*n_heads)       bf16 [ W | W@a_src | W@a_tgt ]
    # vals_ref: (TILE_N, nh)              bf16 transformed features (lane-dense store)
    # sc_ref:   (TILE_N, 2*n_heads)       f32  per-node [src | tgt] attention scores
    acc = jnp.dot(h_ref[...], w_ref[...], preferred_element_type=jnp.float32)
    vals_ref[...] = acc[:, :nh].astype(vals_ref.dtype)
    sc_ref[...] = acc[:, nh:]


# --------------------------------------------------------------------------------------
# Kernel 2: masked attention softmax + neighbour aggregation, row-tiled, all heads in body
# --------------------------------------------------------------------------------------
def _gat_attention_kernel(sc_ref, tgt_ref, adj_ref, vals_ref, out_ref, *,
                          n_heads: int, n_hidden: int, slope: float, concat: bool):
    # sc_ref:   (TILE_N, 2*n_heads) f32   columns :n_heads are a_src . Wh_i (query rows)
    # tgt_ref:  (n_heads, N)        f32   a_tgt . Wh_j, pre-transposed (grid-invariant)
    # adj_ref:  (TILE_N, N)         int8  adjacency stripe (0/1)
    # vals_ref: (N, n_heads*Hh)     bf16  transformed features (grid-invariant)
    # out_ref:  concat -> (TILE_N, n_heads*Hh) f32 ; else (TILE_N, Hh) f32 head-mean

    # Additive connectivity bias, built ONCE per row tile (amortised over heads).  In f32,
    # -9e16 + O(|e|) rounds back to exactly -9e16, so adding the bias reproduces the
    # reference's where(adj > 0, e, -9e16) for |e| << 4e9.
    adj_f = adj_ref[...].astype(jnp.float32)
    bias = jnp.where(adj_f > 0.0, jnp.float32(0.0), jnp.float32(-9e16))

    acc = None
    heads = []
    for h in range(n_heads):                              # static unroll; n_heads is small
        e = sc_ref[:, h:h + 1] + tgt_ref[h:h + 1, :]      # (TILE_N, N) attention logits
        e = jnp.maximum(e, slope * e)                     # LeakyReLU (valid for slope in [0,1])
        e = e + bias                                      # mask non-edges

        # row-wise softmax in f32 (v5e-safe)
        m = jnp.max(e, axis=-1, keepdims=True)
        p = jnp.exp(e - m)
        denom = jnp.sum(p, axis=-1, keepdims=True)

        # Neighbour aggregation on the MXU: bf16 x bf16 -> f32.  Normalisation is folded
        # into the (TILE_N, Hh) epilogue instead of scaling the (TILE_N, N) weights.
        hp = jnp.dot(p.astype(vals_ref.dtype),
                     vals_ref[:, h * n_hidden:(h + 1) * n_hidden],
                     preferred_element_type=jnp.float32)          # (TILE_N, Hh)
        hp = hp * pl.reciprocal(denom, approx=True)               # EUP slot, ~free

        if concat:
            heads.append(hp)
        else:
            acc = hp if acc is None else acc + hp

    if concat:
        out_ref[...] = jnp.concatenate(heads, axis=-1)    # single lane-dense 128-wide store
    else:
        out_ref[...] = acc * jnp.float32(1.0 / n_heads)   # concat=False head mean, in-kernel


# --------------------------------------------------------------------------------------
# Wrapper
# --------------------------------------------------------------------------------------
def gat_forward(h, adj, W, a, *, n_heads: int, n_hidden: int, concat: bool = False,
                leaky_relu_slope: float = 0.2, tile_n: int | None = None):
    """Pallas GAT forward (eval mode)."""
    n_nodes, in_features = h.shape
    assert W.shape == (in_features, n_hidden * n_heads)
    assert a.shape == (n_heads, 2 * n_hidden, 1)
    assert 0.0 <= leaky_relu_slope <= 1.0
    nh = n_heads * n_hidden

    vmem_cap = _vmem_capacity_bytes()
    vmem_limit = max(32 * 1024 * 1024, (2 * vmem_cap) // 3)
    tile = tile_n if tile_n is not None else _pick_row_tile(
        n_nodes, n_heads, n_hidden, (3 * vmem_limit) // 4)
    assert n_nodes % tile == 0, "row tile must divide n_nodes"
    assert tile == n_nodes or tile % 32 == 0, \
        "row tile must be a multiple of 32 (int8/bf16 sublane packing) or cover all nodes"
    n_tiles = n_nodes // tile

    # --- parameter-only glue (tiny): fold a_src / a_tgt into the weight matrix ----------
    W_heads = W.reshape(in_features, n_heads, n_hidden)
    a_src = a[:, :n_hidden, 0]                           # (n_heads, Hh)
    a_tgt = a[:, n_hidden:, 0]                           # (n_heads, Hh)
    w_src = jnp.einsum("fhd,hd->fh", W_heads, a_src)     # (F, n_heads)
    w_tgt = jnp.einsum("fhd,hd->fh", W_heads, a_tgt)     # (F, n_heads)
    W_aug = jnp.concatenate([W, w_src, w_tgt], axis=1).astype(jnp.bfloat16)
    n_cols = nh + 2 * n_heads

    # --- kernel 1: fused transform + score projections (bf16 MXU, split lane-dense outs) -
    vals, scores = pl.pallas_call(
        functools.partial(_transform_kernel, nh=nh),
        out_shape=(jax.ShapeDtypeStruct((n_nodes, nh), jnp.bfloat16),
                   jax.ShapeDtypeStruct((n_nodes, 2 * n_heads), jnp.float32)),
        grid_spec=pltpu.PrefetchScalarGridSpec(
            num_scalar_prefetch=0,
            grid=(n_tiles,),
            in_specs=[
                pl.BlockSpec((tile, in_features), lambda i: (i, 0)),
                pl.BlockSpec((in_features, n_cols), lambda i: (0, 0)),
            ],
            out_specs=[
                pl.BlockSpec((tile, nh), lambda i: (i, 0)),
                pl.BlockSpec((tile, 2 * n_heads), lambda i: (i, 0)),
            ]),
        compiler_params=pltpu.CompilerParams(dimension_semantics=("parallel",)),
    )(h.astype(jnp.bfloat16), W_aug)

    # Tiny XLA glue: (N, n_heads) -> (n_heads, N) target-score transpose (a few KiB).
    tgt_t = scores[:, n_heads:].T

    # Adjacency as int8 (0/1): 4x less DMA + VMEM for the dominant (tile, N) stripe.
    adj_i8 = adj if adj.dtype == jnp.int8 else (adj > 0).astype(jnp.int8)

    out_cols = nh if concat else n_hidden
    kernel = functools.partial(_gat_attention_kernel, n_heads=n_heads,
                               n_hidden=n_hidden, slope=leaky_relu_slope, concat=concat)

    out = pl.pallas_call(
        kernel,
        out_shape=jax.ShapeDtypeStruct((n_nodes, out_cols), jnp.float32),
        grid_spec=pltpu.PrefetchScalarGridSpec(
            num_scalar_prefetch=0,
            grid=(n_tiles,),
            in_specs=[
                pl.BlockSpec((tile, 2 * n_heads), lambda i: (i, 0)),   # per-node scores
                pl.BlockSpec((n_heads, n_nodes), lambda i: (0, 0)),    # tgt scores (invariant)
                pl.BlockSpec((tile, n_nodes), lambda i: (i, 0)),       # adjacency stripe (int8)
                pl.BlockSpec((n_nodes, nh), lambda i: (0, 0)),         # values (invariant)
            ],
            out_specs=pl.BlockSpec((tile, out_cols), lambda i: (i, 0)),
        ),
        compiler_params=pltpu.CompilerParams(
            dimension_semantics=("parallel",),
            vmem_limit_bytes=vmem_limit,
        ),
    )(scores, tgt_t, adj_i8, vals)
    return out


# --------------------------------------------------------------------------------------
# Pure-JAX reference (mirrors the PyTorch forward in eval mode)
# --------------------------------------------------------------------------------------
def gat_reference(h, adj, W, a, *, n_heads, n_hidden, slope=0.2, concat=False):
    n_nodes = h.shape[0]
    ht = (h @ W).reshape(n_nodes, n_heads, n_hidden).transpose(1, 0, 2)
    src = jnp.matmul(ht, a[:, :n_hidden, :])
    tgt = jnp.matmul(ht, a[:, n_hidden:, :])
    e = src + jnp.swapaxes(tgt, -1, -2)
    e = jnp.where(e > 0, e, slope * e)
    e = jnp.where(adj > 0, e, -9e16)
    att = jax.nn.softmax(e, axis=-1)
    h_prime = jnp.matmul(att, ht)
    if concat:
        return h_prime.transpose(1, 0, 2).reshape(n_nodes, n_heads * n_hidden)
    return jnp.mean(h_prime, axis=0)


if __name__ == "__main__":
    n_nodes = 256
    in_features = 64
    out_features = 32          # concat=False -> n_hidden = out_features
    n_heads = 4
    n_hidden = out_features

    key = jax.random.PRNGKey(0)
    k_h, k_adj, k_w, k_a = jax.random.split(key, 4)

    # node features
    h = jax.random.normal(k_h, (n_nodes, in_features), dtype=jnp.float32)

    # random symmetric adjacency with self-loops, stored compactly as int8 (0/1)
    rnd = jax.random.uniform(k_adj, (n_nodes, n_nodes))
    adj = ((rnd + rnd.T > 1.0) | jnp.eye(n_nodes, dtype=bool)).astype(jnp.int8)

    # deterministic xavier-normal parameter init (shapes from the module __init__)
    std_W = float(np.sqrt(2.0 / (in_features + n_hidden * n_heads)))
    W = std_W * jax.random.normal(k_w, (in_features, n_hidden * n_heads),
                                  dtype=jnp.float32)
    std_a = float(np.sqrt(2.0 / (2 * n_hidden + n_heads)))
    a = std_a * jax.random.normal(k_a, (n_heads, 2 * n_hidden, 1),
                                  dtype=jnp.float32)

    # VMEM-aware tile picker yields 128 here -> 2 row tiles (exercises the tiled path and
    # gives both v7x TensorCores work).
    out = gat_forward(h, adj, W, a, n_heads=n_heads, n_hidden=n_hidden)
    out = jax.block_until_ready(out)

    ref = gat_reference(h, adj, W, a, n_heads=n_heads, n_hidden=n_hidden)
    # Tolerance loosened vs. pure-f32: bf16 MXU operands (transform, attention weights,
    # values) and the approx EUP reciprocal; observed error is well under these bounds.
    np.testing.assert_allclose(np.asarray(out), np.asarray(ref),
                               rtol=2e-2, atol=2e-2)

    print("KERNEL_OK")
</pallas_src>

<mosaic_0001>
module attributes {stable_mosaic.version = 11 : i64} {
  func.func @_transform_kernel(%arg0: i32, %arg1: memref<128x64xbf16, #tpu.memory_space<vmem>>, %arg2: memref<64x136xbf16, #tpu.memory_space<vmem>>, %arg3: memref<128x128xbf16, #tpu.memory_space<vmem>>, %arg4: memref<128x8xf32, #tpu.memory_space<vmem>>) attributes {dimension_semantics = [#tpu.dimension_semantics<parallel>], iteration_bounds = array<i64: 2>, scalar_prefetch = 0 : i64, scratch_operands = 0 : i64, tpu.core_type = #tpu.core_type<tc>, window_params = [{transform_indices = @transform_0, window_bounds = array<i64: 128, 64>}, {pipeline_mode = #tpu.pipeline_mode<synchronous>, transform_indices = @transform_1, window_bounds = array<i64: 64, 136>}, {transform_indices = @transform_2, window_bounds = array<i64: 128, 128>}, {transform_indices = @transform_3, window_bounds = array<i64: 128, 8>}]} {
    %c0 = arith.constant 0 : index
    %c0_0 = arith.constant 0 : index
    %0 = vector.load %arg1[%c0, %c0_0] : memref<128x64xbf16, #tpu.memory_space<vmem>>, vector<128x64xbf16>
    %c0_1 = arith.constant 0 : index
    %c0_2 = arith.constant 0 : index
    %1 = vector.load %arg2[%c0_1, %c0_2] : memref<64x136xbf16, #tpu.memory_space<vmem>>, vector<64x136xbf16>
    %cst = arith.constant dense<0.000000e+00> : vector<128x136xf32>
    %2 = tpu.matmul %0, %1, %cst {dimension_numbers = #tpu.dot_dimension_numbers<[1], [0], [0], [1], [0, 0, 1, 1], [], []>} : vector<128x64xbf16>, vector<64x136xbf16>, vector<128x136xf32> -> vector<128x136xf32>
    %3 = vector.extract_strided_slice %2 {offsets = [0, 0], sizes = [128, 128], strides = [1, 1]} : vector<128x136xf32> to vector<128x128xf32>
    %4 = arith.truncf %3 : vector<128x128xf32> to vector<128x128xbf16>
    %c0_3 = arith.constant 0 : index
    %c0_4 = arith.constant 0 : index
    %5 = vector.load %arg3[%c0_3, %c0_4] : memref<128x128xbf16, #tpu.memory_space<vmem>>, vector<128x128xbf16>
    tpu.vector_store %arg3[%c0_3, %c0_4], %4 {strides = array<i32>} : memref<128x128xbf16, #tpu.memory_space<vmem>>, vector<128x128xbf16>,
    %6 = vector.extract_strided_slice %2 {offsets = [0, 128], sizes = [128, 8], strides = [1, 1]} : vector<128x136xf32> to vector<128x8xf32>
    %c0_5 = arith.constant 0 : index
    %c0_6 = arith.constant 0 : index
    %7 = vector.load %arg4[%c0_5, %c0_6] : memref<128x8xf32, #tpu.memory_space<vmem>>, vector<128x8xf32>
    tpu.vector_store %arg4[%c0_5, %c0_6], %6 {strides = array<i32>} : memref<128x8xf32, #tpu.memory_space<vmem>>, vector<128x8xf32>,
    return
  }
  func.func @transform_0(%arg0: i32) -> (i32, i32) {
    %c0_i32 = arith.constant 0 : i32
    %c0_i32_0 = arith.constant 0 : i32
    return %arg0, %c0_i32 : i32, i32
  }
  func.func @transform_1(%arg0: i32) -> (i32, i32) {
    %c0_i32 = arith.constant 0 : i32
    %c0_i32_0 = arith.constant 0 : i32
    %c0_i32_1 = arith.constant 0 : i32
    return %c0_i32, %c0_i32_0 : i32, i32
  }
  func.func @transform_2(%arg0: i32) -> (i32, i32) {
    %c0_i32 = arith.constant 0 : i32
    %c0_i32_0 = arith.constant 0 : i32
    return %arg0, %c0_i32 : i32, i32
  }
  func.func @transform_3(%arg0: i32) -> (i32, i32) {
    %c0_i32 = arith.constant 0 : i32
    %c0_i32_0 = arith.constant 0 : i32
    return %arg0, %c0_i32 : i32, i32
  }
}

</mosaic_0001>

<bundles_post_ra>
// kernel: tpu_custom_call.1
= control target key start
LH: loop header
LB: loop body
LE: loop exit
PB: predicated region body
PF: predicated region fallthrough
CT: control target
= control target key end

     0   :  { %9 = vsyncpa [#allocation3], 0  ;;  %s1072_s0 = inlined_call_operand.vmem [shape: bf16[256,64], index: 0, kind: input, shape index: {}]   ;;  %s1073_s1 = inlined_call_operand.vmem [shape: bf16[64,136], index: 1, kind: input, shape index: {}]   ;;  %s1074_s2 = inlined_call_operand.hbm [shape: bf16[256,128], index: 2, kind: output, shape index: {0}]   ;;  %s1075_s3 = inlined_call_operand.vmem [shape: f32[256,8], index: 3, kind: output, shape index: {1}]  }
   0x1   :  { %11 = vsyncpa [#allocation3 + $0x1], 0  ;;  %s868_s12 = smov 0   ;;  %s870_s13 = smov 0  }
   0x2   :  { %s872_s14 = smov 0   ;;  %s874_s15 = smov 0  }
   0x3 LB: > { %s889_s16 = sadd.s32 4294967295, %s844_s15   ;;  %s575_s17 = sadd.s32 4294967294, %s844_s15   ;;  %s844_s15 = sphi %s874_s15, %s1081_s15   ;;  %s840_s14 = sphi %s872_s14, %s1080_s14   ;;  %s836_s13 = sphi %s870_s13, %s1079_s13   ;;  %s832_s12 = sphi %s868_s12, %s1078_s12  }
   0x4   : > { %s893_s18 = sadd.s32 1, %s844_s15   ;;  %s71_s19 = sadd.s32 1, %s840_s14 }
   0x5   : > { %s68_s20 = ssub.s32 %s844_s15, %s893_s18  ;;  %p81_p0 = scmp.ne.s32.totalorder %s840_s14, %s836_s13 }
   0x6   : > { %p69_p1 = scmp.eq.s32.totalorder %s68_s20, 0  ;;  %p82_p2 = scmp.eq.s32.totalorder %s889_s16, 1 }
   0x7   : > { %p87_p3 = scmp.ne.s32.totalorder %s836_s13, %s832_s12  ;;  %p88_p4 = scmp.eq.s32.totalorder %s575_s17, 1 }
   0x8   : > { %s904_s21 = scalar_select %p69_p1, %s840_s14, %s71_s19  }
   0x9   : > { %p906_p5 = por %p82_p2, %p81_p0  ;;  %p910_p6 = por %p88_p4, %p87_p3 }
   0xa   : > { %p578_p7 = scmp.ge.s32.totalorder %s844_s15, 1  ;;  %p144_p8 = scmp.lt.s32.totalorder %s844_s15, 3 }
   0xc   : > { %p145_p9 = pnand %p578_p7, %p144_p8 }
   0xd   : > { %s580_s30 = sshll.u32 (!%p145_p9), %s889_s16, 4  ;;  %s163_s29 = sand.u32 (!%p145_p9), 1, %s836_s13  }
   0xe   : > { %148 = sbr.rel (%p145_p9) target bundleno = 231 (0xe7), region = 28  ;;  %p174_p10 = scmp.lt.s32.totalorder (!%p145_p9), %s580_s30, 31 }
   0xf   : > { %s579_s4 = sshll.u32 (!%p145_p9), %s163_s29, 6  ;;  %s685_s5 = sshll.u32 (!%p145_p9), %s889_s16, 6 }
  0x10   : > { %s480_s8 = scalar_lea.hbm (!%p145_p9), %s1074_s2, %s685_s5  ;;  %s464_s10 = scalar_lea.sflag (!%p145_p9), [#allocation3], %s163_s29 }
  0x11   : > { %s483_s16 = sshll.u32 (!%p145_p9), %s480_s8, 4  ;;  %s484_s16 = int_to_ptr.hbm [resolvable:$true] %s483_s16 }
  0x12   : > { %s796_s11 = sshra.s32 (!%p145_p9), %s484_s16, 4  ;;  %s797_s11 = int_to_ptr.hbm [resolvable:$true] %s796_s11 }
  0x13   : > { %v642_v0 = vld [vmem:[%s1073_s1 + $0x30] sm:$0xf]  ;;  %v684_v1 = vld [vmem:[%s1073_s1 + $0x34] sm:$0xf0]  ;;  %v683_v2 = vld [vmem:[%s1073_s1 + $0x34] sm:$0xf]  ;;  %p803_p0 = scmp.lt.s32.totalorder %s797_s11, %s1074_s2 }
  0x14   : > { %v643_v3 = vor.u32 %v684_v1, %v642_v0  ;;  %v644_v4 = vld [vmem:[%s1073_s1 + $0x38] sm:$0xf0]  ;;  %v634_v5 = vld [vmem:[%s1073_s1 + $0x20] sm:$0xf]  ;;  %v682_v6 = vld [vmem:[%s1073_s1 + $0x24] sm:$0xf0] }
  0x15   : > { %v647_v7 = vor.u32 %v683_v2, %v644_v4  ;;  %v681_v8 = vld [vmem:[%s1073_s1 + $0x24] sm:$0xf]  ;;  %v636_v9 = vld [vmem:[%s1073_s1 + $0x28] sm:$0xf0]  ;;  %v635_v10 = vor.u32 %v682_v6, %v634_v5  ;;  %v626_v12 = vld [vmem:[%s1073_s1 + $0x10] sm:$0xf] }
  0x16   : > { %320 = vmatpush.bf16.msra.mxu0 %v643_v3  ;;  %733 = vmatpush.bf16.msra.mxu2 %v643_v3  ;;  %v639_v11 = vor.u32 %v681_v8, %v636_v9  ;;  %v680_v13 = vld [vmem:[%s1073_s1 + $0x14] sm:$0xf0]  ;;  %v679_v14 = vld [vmem:[%s1073_s1 + $0x14] sm:$0xf]  ;;  %v628_v15 = vld [vmem:[%s1073_s1 + $0x18] sm:$0xf0] }
  0x17   : > { %737 = vmatpush.bf16.msra.mxu3 %v647_v7  ;;  %369 = vmatpush.bf16.msra.mxu1 %v647_v7  ;;  %v627_v16 = vor.u32 %v680_v13, %v626_v12  ;;  %v631_v17 = vor.u32 %v679_v14, %v628_v15  ;;  %v618_v18 = vld [vmem:[%s1073_s1] sm:$0xf]  ;;  %v678_v19 = vld [vmem:[%s1073_s1 + $0x4] sm:$0xf0]  ;;  %s1083_s30 = smov (!%p174_p10, %s580_s30), 31  ;;  %vm291_vm0 = vcmask 523264  }
  0x18   : > { %v677_v20 = vld [vmem:[%s1073_s1 + $0x4] sm:$0xf]  ;;  %v620_v21 = vld [vmem:[%s1073_s1 + $0x8] sm:$0xf0]  ;;  %s581_s17 = sshll.u32 %s1083_s30, 2  ;;  %v619_v22 = vor.u32 %v678_v19, %v618_v18  ;;  %s583_s25 = sshll.u32 %s1083_s30, 3 }
  0x19   : > { %s177_s24 = scalar_lea.vmem %s1072_s0, %s581_s17  ;;  %v623_v23 = vor.u32 %v677_v20, %v620_v21  ;;  %s991_s28 = scalar_lea.vmem %s1075_s3, %s583_s25  ;;  %vm446_vm1 = vcmask 64512  }
  0x1a   : > { %321 = vmatpush.bf16.msra.mxu0 %v635_v10  ;;  %734 = vmatpush.bf16.msra.mxu2 %v635_v10  ;;  %v669_v24 = vld [vmem:[%s177_s24] sm:$0xff]  ;;  %v670_v26 = vld [vmem:[%s177_s24 + $0x8] sm:$0xff]  ;;  %v671_v28 = vld [vmem:[%s177_s24 + $0x10] sm:$0xff]  ;;  %s1002_s30 = scalar_lea.vmem [#allocation2], %s579_s4  ;;  %s798_s17 = scalar_lea.hbm %s797_s11, 64 }
  0x1b   : > { %738 = vmatpush.bf16.msra.mxu3 %v639_v11  ;;  %370 = vmatpush.bf16.msra.mxu1 %v639_v11  ;;  %v673_v25 = vld [vmem:[%s177_s24 + $0x20] sm:$0xff]  ;;  %v674_v27 = vld [vmem:[%s177_s24 + $0x28] sm:$0xff]  ;;  %v675_v29 = vld [vmem:[%s177_s24 + $0x30] sm:$0xff]  ;;  %s481_s9 = sshll.u32 %s1002_s30, 4  ;;  %p799_p11 = scmp.ne.s32.totalorder %s797_s11, %s798_s17  ;;  %s482_s9 = int_to_ptr.vmem [resolvable:$true] %s481_s9 }
  0x1c   : > { %v672_v30 = vld [vmem:[%s177_s24 + $0x18] sm:$0xff] }
  0x1d   : > { %v676_v31 = vld [vmem:[%s177_s24 + $0x38] sm:$0xff]  ;;  %p800_p12 = pnand %p799_p11, %p906_p5  ;;  %s802_s24 = scalar_lea.hbm %s1074_s2, 128 }
  0x1e   : > { %322 = vmatpush.bf16.msra.mxu0 %v627_v16  ;;  %735 = vmatpush.bf16.msra.mxu2 %v627_v16  ;;  %p804_p1 = scmp.lt.s32.totalorder %s802_s24, %s798_s17 }
  0x1f   : > { %739 = vmatpush.bf16.msra.mxu3 %v631_v17  ;;  %371 = vmatpush.bf16.msra.mxu1 %v631_v17  ;;  %p801_p13 = pneg %p800_p12 }
  0x20   : > { %p805_p2 = por %p804_p1, %p803_p0 }
  0x22   : > { %323 = vmatpush.bf16.msra.mxu0 %v619_v22  ;;  %736 = vmatpush.bf16.msra.mxu2 %v619_v22  ;;  %p806_p3 = pnand %p805_p2, %p801_p13 }
  0x23   : > { %740 = vmatpush.bf16.msra.mxu3 %v623_v23  ;;  %372 = vmatpush.bf16.msra.mxu1 %v623_v23 }
  0x25   : > { %648 = vmatmul.msk.bf16.vlgmr.msra.gmra.mxu0 %vm291_vm0, %v669_v24  ;;  %652 = vmatmul.msk.bf16.vlgmr.msra.gmra.mxu2 %vm291_vm0, %v673_v25 }
  0x26   : > { %660 = vmatmul.msk.bf16.vlgmr.msra.gmra.mxu3 %vm291_vm0, %v673_v25  ;;  %656 = vmatmul.msk.bf16.vlgmr.msra.gmra.mxu1 %vm291_vm0, %v669_v24 }
  0x35   : > { %649 = vmatmul.msk.bf16.gmra.mxu0 %vm291_vm0, %v670_v26  ;;  %653 = vmatmul.msk.bf16.gmra.mxu2 %vm291_vm0, %v674_v27 }
  0x36   : > { %661 = vmatmul.msk.bf16.gmra.mxu3 %vm291_vm0, %v674_v27  ;;  %657 = vmatmul.msk.bf16.gmra.mxu1 %vm291_vm0, %v670_v26 }
  0x45   : > { %650 = vmatmul.msk.bf16.gmra.mxu0 %vm291_vm0, %v671_v28  ;;  %654 = vmatmul.msk.bf16.gmra.mxu2 %vm291_vm0, %v675_v29 }
  0x46   : > { %662 = vmatmul.msk.bf16.gmra.mxu3 %vm291_vm0, %v675_v29  ;;  %658 = vmatmul.msk.bf16.gmra.mxu1 %vm291_vm0, %v671_v28 }
  0x55   : > { %651 = vmatmul.msk.bf16.gmra.mxu0 %vm291_vm0, %v672_v30  ;;  %655 = vmatmul.msk.bf16.gmra.mxu2 %vm291_vm0, %v676_v31 }
  0x56   : > { %663 = vmatmul.msk.bf16.gmra.mxu3 %vm291_vm0, %v676_v31  ;;  %659 = vmatmul.msk.bf16.gmra.mxu1 %vm291_vm0, %v672_v30 }
  0xa2   : > { %v325_v32 = vpop.f32.mrf.mxu0 }
  0xa3   : > { %v374_v33 = vpop.f32.mrf.mxu1 }
  0xa4   : > { %447 = vst.msk [vmem:[%s991_s28] sm:$0xff] %vm446_vm1, %v374_v33 }
  0xa8   : > { %v345_v34 = vpop.f32.mrf.mxu2 }
  0xa9   : > { %v394_v35 = vpop.f32.mrf.mxu3 }
  0xaa   : > { %455 = vst.msk [vmem:[%s991_s28 + $0x40] sm:$0xff] %vm446_vm1, %v394_v35  ;;  %v327_v36 = vpop.f32.mrf.mxu0 }
  0xab   : > { %v689_v37 = vpack.c.bf16 %v327_v36, %v325_v32  ;;  %v376_v38 = vpop.f32.mrf.mxu1 }
  0xac   : > { %448 = vst.msk [vmem:[%s991_s28 + $0x8] sm:$0xff] %vm446_vm1, %v376_v38 }
  0xad   : > { %690 = vst [vmem:[%s1002_s30] sm:$0xff] %v689_v37  }
  0xb0   : > { %v347_v39 = vpop.f32.mrf.mxu2 }
  0xb1   : > { %v709_v40 = vpack.c.bf16 %v347_v39, %v345_v34  ;;  %v396_v41 = vpop.f32.mrf.mxu3 }
  0xb2   : > { %456 = vst.msk [vmem:[%s991_s28 + $0x48] sm:$0xff] %vm446_vm1, %v396_v41  ;;  %v330_v42 = vpop.f32.mrf.mxu0 }
  0xb3   : > { %729 = vst [vmem:[%s1002_s30 + $0x20] sm:$0xff] %v709_v40   ;;  %v379_v43 = vpop.f32.mrf.mxu1 }
  0xb4   : > { %449 = vst.msk [vmem:[%s991_s28 + $0x10] sm:$0xff] %vm446_vm1, %v379_v43 }
  0xb8   : > { %v350_v44 = vpop.f32.mrf.mxu2 }
  0xb9   : > { %v399_v45 = vpop.f32.mrf.mxu3 }
  0xba   : > { %457 = vst.msk [vmem:[%s991_s28 + $0x50] sm:$0xff] %vm446_vm1, %v399_v45  ;;  %v332_v46 = vpop.f32.mrf.mxu0 }
  0xbb   : > { %v694_v47 = vpack.c.bf16 %v332_v46, %v330_v42  ;;  %v381_v48 = vpop.f32.mrf.mxu1 }
  0xbc   : > { %450 = vst.msk [vmem:[%s991_s28 + $0x18] sm:$0xff] %vm446_vm1, %v381_v48 }
  0xbd   : > { %726 = vst [vmem:[%s1002_s30 + $0x8] sm:$0xff] %v694_v47  }
  0xc0   : > { %v352_v49 = vpop.f32.mrf.mxu2 }
  0xc1   : > { %v714_v50 = vpack.c.bf16 %v352_v49, %v350_v44  ;;  %v401_v51 = vpop.f32.mrf.mxu3 }
  0xc2   : > { %458 = vst.msk [vmem:[%s991_s28 + $0x58] sm:$0xff] %vm446_vm1, %v401_v51  ;;  %v335_v52 = vpop.f32.mrf.mxu0 }
  0xc3   : > { %730 = vst [vmem:[%s1002_s30 + $0x28] sm:$0xff] %v714_v50   ;;  %v384_v53 = vpop.f32.mrf.mxu1 }
  0xc4   : > { %451 = vst.msk [vmem:[%s991_s28 + $0x20] sm:$0xff] %vm446_vm1, %v384_v53 }
  0xc8   : > { %v355_v54 = vpop.f32.mrf.mxu2 }
  0xc9   : > { %v404_v55 = vpop.f32.mrf.mxu3 }
  0xca   : > { %459 = vst.msk [vmem:[%s991_s28 + $0x60] sm:$0xff] %vm446_vm1, %v404_v55  ;;  %v337_v56 = vpop.f32.mrf.mxu0 }
  0xcb   : > { %v699_v57 = vpack.c.bf16 %v337_v56, %v335_v52  ;;  %v386_v58 = vpop.f32.mrf.mxu1 }
  0xcc   : > { %452 = vst.msk [vmem:[%s991_s28 + $0x28] sm:$0xff] %vm446_vm1, %v386_v58 }
  0xcd   : > { %727 = vst [vmem:[%s1002_s30 + $0x10] sm:$0xff] %v699_v57  }
  0xd0   : > { %v357_v59 = vpop.f32.mrf.mxu2 }
  0xd1   : > { %v719_v60 = vpack.c.bf16 %v357_v59, %v355_v54  ;;  %v406_v61 = vpop.f32.mrf.mxu3 }
  0xd2   : > { %460 = vst.msk [vmem:[%s991_s28 + $0x68] sm:$0xff] %vm446_vm1, %v406_v61  ;;  %v340_v62 = vpop.f32.mrf.mxu0 }
  0xd3   : > { %731 = vst [vmem:[%s1002_s30 + $0x30] sm:$0xff] %v719_v60   ;;  %v389_v63 = vpop.f32.mrf.mxu1 }
  0xd4   : > { %453 = vst.msk [vmem:[%s991_s28 + $0x30] sm:$0xff] %vm446_vm1, %v389_v63 }
  0xd8   : > { %v360_v0 = vpop.f32.mrf.mxu2 }
  0xd9   : > { %v409_v1 = vpop.f32.mrf.mxu3 }
  0xda   : > { %461 = vst.msk [vmem:[%s991_s28 + $0x70] sm:$0xff] %vm446_vm1, %v409_v1  ;;  %v342_v2 = vpop.f32.mrf.mxu0 }
  0xdb   : > { %v704_v3 = vpack.c.bf16 %v342_v2, %v340_v62  ;;  %v391_v4 = vpop.f32.mrf.mxu1 }
  0xdc   : > { %454 = vst.msk [vmem:[%s991_s28 + $0x38] sm:$0xff] %vm446_vm1, %v391_v4 }
  0xdd   : > { %728 = vst [vmem:[%s1002_s30 + $0x18] sm:$0xff] %v704_v3  }
  0xe0   : > { %v362_v5 = vpop.f32.mrf.mxu2 }
  0xe1   : > { %v724_v6 = vpack.c.bf16 %v362_v5, %v360_v0  ;;  %v411_v7 = vpop.f32.mrf.mxu3 }
  0xe2   : > { %462 = vst.msk [vmem:[%s991_s28 + $0x78] sm:$0xff] %vm446_vm1, %v411_v7 }
  0xe3   : > { %732 = vst [vmem:[%s1002_s30 + $0x38] sm:$0xff] %v724_v6  }
  0xe4   : > { %809 = shalt.err (!%p806_p3)
}
  0xe5   : > { %s846_s27 = smov 64   ;;  %s847_s28 = smov 4  }
  0xe6   : > { %741 = dma.vmem_to_hbm [thread:$0]  (%p906_p5), %s482_s9, 1024, %s484_s16, %s464_s10, %s846_s27, %s846_s27, %s847_s28  }
  0xe7 PF: > { %p747_p4 = scmp.ge.s32.totalorder %s844_s15, 2  ;;  %s502_s29 = sand.u32 1, %s832_s12  }
  0xe8   : > { %s503_s4 = scalar_lea.sflag [#allocation3], %s502_s29 }
  0xe9   : > { %p744_p7 = pnand %p747_p4, %p910_p6 }
  0xeb   : > { %p745_p8 = pneg %p744_p7 }
  0xed   : > { %827 = dma.done.wait (%p745_p8), %s503_s4, 1024  }
  0xee   : > { %829 = vsyncadd (%p745_p8), %s503_s4, 4294966272  ;;  %p14_p9 = scmp.ge.s32.totalorder %s893_s18, 4   ;;  %s1078_s12 = smov %s836_s13 }
  0xef   : > { %s1079_s13 = smov %s840_s14  ;;  %s1080_s14 = smov %s904_s21 }
  0xf0   : > { %s1081_s15 = smov %s893_s18  ;;  %16 = sbr.rel (!%p14_p9) target bundleno = 3 (0x3), region = 75 }
  0xf5   :  { %517 = vsyncpa [#allocation3], 1 }
  0xf6   :  { %519 = vsyncpa [#allocation3 + $0x1], 1 }

</bundles_post_ra>
